<compile_context>
chip_gen: v7x
topology: tpu7x:2x2x1
jax: 0.10.0
libtpu: 0.0.40
codegen_flags: <defaults>
</compile_context>

<pallas_src>
import functools

import jax
import jax.numpy as jnp
from jax import lax
from jax.experimental import pallas as pl
from jax.experimental.pallas import tpu as pltpu

_MIB = 1024 * 1024


def _cdiv(a, b):
    return -(-a // b)


def _softplus(x):
    # Numerically stable log(1 + exp(x)).
    return jnp.maximum(x, 0.0) + jnp.log(1.0 + jnp.exp(-jnp.abs(x)))


def _dot_nt_f32(a, b):
    # a @ b.T (contract axis 1 of both operands), f32 accumulation on the MXU.
    return lax.dot_general(a, b, (((1,), (1,)), ((), ())),
                           preferred_element_type=jnp.float32)


def _vmem_capacity_bytes():
    try:
        info = pltpu.get_tpu_info()
        cap = getattr(info, "vmem_capacity_bytes", None)
        if cap:
            return int(cap)
    except Exception:
        pass
    return 64 * _MIB  # conservative default (v7x per-core VMEM)


def _pick_tm(n, vmem_cap):
    """Row-slab height: largest 256/128/8-aligned TM whose (TM, N) f32 slab
    plus ~6 live elementwise temporaries fits a fraction of chip VMEM."""
    usable = max(vmem_cap - 16 * _MIB, 16 * _MIB)
    slab_elems = max(usable // (3 * 6 * 4), 8 * n)       # tm*n element budget
    cap_tm = max(slab_elems // n, 8)
    n_up8 = _cdiv(n, 8) * 8
    tm = min(512, cap_tm, n_up8)
    for align in (256, 128, 8):
        if tm >= align:
            tm = (tm // align) * align
            break
    return max(int(tm), 8)


def _semi_soft_trihard_kernel(tm, n, g_half, ragged,
                              alpha_ref, pos_col_ref, pos_row_ref, sat_ref,
                              grd_hbm,
                              g2s_ref, cmin_ref, cmax_ref,
                              grd_vmem, dma_sem):
    c = pl.program_id(0)          # row split (one per TensorCore on v7x)
    i = pl.program_id(1)          # row slab within this split

    @pl.when(i == 0)
    def _init():
        # Once per split: bring grd into VMEM (single buffer) and reset the
        # accumulators that live in this split's output blocks.
        cp = pltpu.make_async_copy(grd_hbm, grd_vmem, dma_sem)
        cp.start()
        cp.wait()
        g2s_ref[...] = jnp.zeros(g2s_ref.shape, jnp.float32)
        cmin_ref[...] = jnp.full(cmin_ref.shape, jnp.inf, jnp.float32)
        cmax_ref[...] = jnp.full(cmax_ref.shape, -jnp.inf, jnp.float32)

    # One MXU matmul per slab: similarities for rows [r0, r0+TM), f32 accum.
    s = _dot_nt_f32(sat_ref[...], grd_vmem[...])                 # (TM, N)

    slab = c * g_half + i
    r0 = pl.multiple_of(slab * tm, tm)
    row_ids = lax.broadcasted_iota(jnp.int32, (tm, 1), 0) + r0   # (TM, 1)
    col_ids = lax.broadcasted_iota(jnp.int32, (1, n), 1)         # (1, N)
    excl = row_ids == col_ids                                    # diag via broadcast
    if ragged:
        row_valid = row_ids < n                                  # (TM, 1)
        excl = jnp.logical_or(excl, jnp.logical_not(row_valid))
    s_off = jnp.where(excl, -jnp.inf, s)     # diagonal / padded rows -> -inf

    a2 = 2.0 * alpha_ref[0]                  # alpha*(pos - hn) == a2*(q - p)
    p_rows = pos_col_ref[...]                # (TM, 1)
    p_cols = pos_row_ref[...]                # (1, N)

    # ---- g2s branch: row-wise mining, fully resolved within this slab ----
    m1 = jnp.min(jnp.where(s_off > p_rows, s_off, jnp.inf), axis=1, keepdims=True)
    m2 = jnp.max(s_off, axis=1, keepdims=True)
    q = jnp.minimum(jnp.minimum(m1, 1.0), m2)                    # (TM, 1)
    contrib = _softplus(a2 * (q - p_rows))
    if ragged:
        contrib = jnp.where(row_valid, contrib, 0.0)
    g2s_ref[...] += jnp.sum(contrib)

    # ---- s2g branch: column-wise partial reductions across row slabs ----
    m1c = jnp.min(jnp.where(s_off > p_cols, s_off, jnp.inf), axis=0, keepdims=True)
    m2c = jnp.max(s_off, axis=0, keepdims=True)
    cmin_ref[...] = jnp.minimum(cmin_ref[...], m1c)
    cmax_ref[...] = jnp.maximum(cmax_ref[...], m2c)


def semi_soft_trihard(grd_global, sat_global, alpha, *, tm=None, row_splits=2):
    """Pallas TPU implementation of SemiSoftTriHard.forward. Returns a scalar."""
    n, d = grd_global.shape
    assert sat_global.shape == (n, d), (sat_global.shape, (n, d))
    assert n >= 2, "need at least two samples for negative mining"

    vmem_cap = _vmem_capacity_bytes()
    if tm is None:
        tm = _pick_tm(n, vmem_cap)
    tm = max(8, _cdiv(int(tm), 8) * 8)             # sublane-aligned
    n_up8 = _cdiv(n, 8) * 8
    tm = min(tm, n_up8)

    g = _cdiv(n, tm)                               # row slabs needed to cover N
    nsplit = row_splits if g >= row_splits else 1  # dual-TC split only if useful
    g_half = _cdiv(g, nsplit)
    rows_pad = nsplit * g_half * tm
    ragged = rows_pad != n

    dt = sat_global.dtype
    # Positive-pair similarities, hoisted out of the kernel (O(N*D), XLA-fused).
    pos = jnp.sum(sat_global.astype(jnp.float32) * grd_global.astype(jnp.float32),
                  axis=1)                                        # (N,) f32
    pos_row = pos.reshape(1, n)
    pos_col = pos.reshape(n, 1)
    sat_rows = sat_global
    if ragged:
        pad = rows_pad - n
        sat_rows = jnp.pad(sat_global, ((0, pad), (0, 0)))
        pos_col = jnp.pad(pos_col, ((0, pad), (0, 0)))

    alpha_arr = jnp.asarray([alpha], dtype=jnp.float32)

    itemsize = jnp.dtype(dt).itemsize
    need = (n * d * itemsize                       # grd, single VMEM buffer
            + 2 * tm * d * itemsize                # streamed sat slab (x2 bufs)
            + 6 * tm * n * 4                       # similarity slab + live temps
            + 16 * n * 4 + 2 * _MIB)               # pos / accumulators / slack
    ceiling = min(100 * _MIB, max(vmem_cap - 8 * _MIB, 24 * _MIB))
    vmem_limit = int(min(max(need, 24 * _MIB), ceiling))

    kernel = functools.partial(_semi_soft_trihard_kernel, tm, n, g_half, ragged)
    row_map = lambda c, i: (c * g_half + i, 0)
    core_map = lambda c, i: (c, 0, 0)

    g2s_part, col_min, col_max = pl.pallas_call(
        kernel,
        grid=(nsplit, g_half),
        in_specs=[
            pl.BlockSpec(memory_space=pltpu.MemorySpace.SMEM),   # alpha (1,)
            pl.BlockSpec((tm, 1), row_map),                      # pos, sublane
            pl.BlockSpec((1, n), lambda c, i: (0, 0)),           # pos, lane
            pl.BlockSpec((tm, d), row_map),                      # sat, streamed
            pl.BlockSpec(memory_space=pl.ANY),                   # grd, in HBM
        ],
        out_specs=(
            pl.BlockSpec((1, 1, 1), core_map),                   # g2s partial sum
            pl.BlockSpec((1, 1, n), core_map),                   # column min
            pl.BlockSpec((1, 1, n), core_map),                   # column max
        ),
        out_shape=(
            jax.ShapeDtypeStruct((nsplit, 1, 1), jnp.float32),
            jax.ShapeDtypeStruct((nsplit, 1, n), jnp.float32),
            jax.ShapeDtypeStruct((nsplit, 1, n), jnp.float32),
        ),
        scratch_shapes=[
            pltpu.VMEM((n, d), dt),                # resident grd (single buffer)
            pltpu.SemaphoreType.DMA,               # its copy semaphore
        ],
        compiler_params=pltpu.CompilerParams(
            dimension_semantics=("parallel", "arbitrary"),
            vmem_limit_bytes=vmem_limit),
    )(alpha_arr, pos_col, pos_row, sat_rows, grd_global)

    # Tiny O(N) epilogue: combine per-split partials and finish the s2g branch.
    a2 = 2.0 * jnp.float32(alpha)
    cmin = jnp.min(col_min[:, 0, :], axis=0)
    cmax = jnp.max(col_max[:, 0, :], axis=0)
    q_s = jnp.minimum(jnp.minimum(cmin, 1.0), cmax)
    loss_s2g = jnp.sum(_softplus(a2 * (q_s - pos)))
    loss_g2s = jnp.sum(g2s_part)
    # loss = (mean_g2s + mean_s2g) / 2 = (sum_g + sum_s) / (2N)
    return (loss_g2s + loss_s2g) * (0.5 / n)


def _reference(grd, sat, alpha):
    # Pure-JAX mirror of the PyTorch module (dist-space formulation).
    dist = 2.0 - 2.0 * jnp.matmul(sat, grd.T, precision="highest")
    pos = jnp.diag(dist)
    n = dist.shape[0]
    eye = jnp.eye(n, dtype=bool)

    def shn(logits):
        mask_ = jnp.logical_and(logits < pos[:, None], ~eye)
        hn1 = jnp.max(jnp.where(mask_, logits, 0.0), axis=1)
        hn2 = jnp.min(jnp.where(eye, jnp.inf, logits), axis=1)
        return jnp.maximum(hn1, hn2)

    g2s = shn(dist)
    s2g = shn(dist.T)
    w = lambda diff: jnp.mean(jnp.log(1.0 + jnp.exp(diff * alpha)))
    return (w(pos - g2s) + w(pos - s2g)) / 2.0


if __name__ == "__main__":
    # Module __init__(alpha, batch_size): scalars only, no learned weights.
    alpha = 10.0
    batch = 64     # N
    hidden = 32    # D

    key = jax.random.PRNGKey(0)
    k1, k2 = jax.random.split(key)
    grd = jax.random.normal(k1, (batch, hidden), jnp.float32)
    sat = jax.random.normal(k2, (batch, hidden), jnp.float32)
    # L2-normalize rows (typical for these retrieval embeddings).
    grd = grd / jnp.linalg.norm(grd, axis=1, keepdims=True)
    sat = sat / jnp.linalg.norm(sat, axis=1, keepdims=True)

    ref = jax.block_until_ready(_reference(grd, sat, alpha))

    # Auto tile selection (single slab at this size).
    out_auto = jax.block_until_ready(semi_soft_trihard(grd, sat, alpha))
    assert jnp.allclose(out_auto, ref, rtol=1e-5, atol=1e-5), (out_auto, ref)

    # Forced multi-slab with TM that does NOT divide N: exercises the row
    # padding / validity masks, cross-slab column accumulators and the
    # 2-way "parallel" row split with per-core partials.
    out_ragged = jax.block_until_ready(semi_soft_trihard(grd, sat, alpha, tm=24))
    assert jnp.allclose(out_ragged, ref, rtol=1e-5, atol=1e-5), (out_ragged, ref)

    # N that is not even a multiple of the sublane pack.
    n3 = 50
    grd3, sat3 = grd[:n3], sat[:n3]
    ref3 = jax.block_until_ready(_reference(grd3, sat3, alpha))
    out3 = jax.block_until_ready(semi_soft_trihard(grd3, sat3, alpha, tm=16))
    assert jnp.allclose(out3, ref3, rtol=1e-5, atol=1e-5), (out3, ref3)

    print("KERNEL_OK")
</pallas_src>

<mosaic_0001>
module attributes {stable_mosaic.version = 11 : i64} {
  func.func @_semi_soft_trihard_kernel(%arg0: i32, %arg1: i32, %arg2: memref<1xf32, #tpu.memory_space<smem>>, %arg3: memref<64x1xf32, #tpu.memory_space<vmem>>, %arg4: memref<1x64xf32, #tpu.memory_space<vmem>>, %arg5: memref<64x32xf32, #tpu.memory_space<vmem>>, %arg6: memref<64x32xf32, #tpu.memory_space<any>>, %arg7: memref<1x1x1xf32, #tpu.memory_space<vmem>>, %arg8: memref<1x1x64xf32, #tpu.memory_space<vmem>>, %arg9: memref<1x1x64xf32, #tpu.memory_space<vmem>>, %arg10: memref<64x32xf32, #tpu.memory_space<vmem>>, %arg11: memref<!tpu.dma_semaphore, #tpu.memory_space<semaphore_mem>>) attributes {dimension_semantics = [#tpu.dimension_semantics<parallel>, #tpu.dimension_semantics<arbitrary>], iteration_bounds = array<i64: 1, 1>, scalar_prefetch = 0 : i64, scratch_operands = 2 : i64, tpu.core_type = #tpu.core_type<tc>, window_params = [{transform_indices = @transform_0, window_bounds = array<i64: 1>}, {transform_indices = @transform_1, window_bounds = array<i64: 64, 1>}, {pipeline_mode = #tpu.pipeline_mode<synchronous>, transform_indices = @transform_2, window_bounds = array<i64: 1, 64>}, {transform_indices = @transform_3, window_bounds = array<i64: 64, 32>}, {}, {transform_indices = @transform_5, window_bounds = array<i64: 1, 1, 1>}, {transform_indices = @transform_6, window_bounds = array<i64: 1, 1, 64>}, {transform_indices = @transform_7, window_bounds = array<i64: 1, 1, 64>}]} {
    %c0_i32 = arith.constant 0 : i32
    %0 = arith.cmpi eq, %arg1, %c0_i32 : i32
    %1 = arith.extui %0 : i1 to i32
    %c0_i32_0 = arith.constant 0 : i32
    %2 = arith.cmpi ne, %1, %c0_i32_0 : i32
    scf.if %2 {
      tpu.enqueue_dma source(%arg6 : memref<64x32xf32, #tpu.memory_space<any>>) target(%arg10 : memref<64x32xf32, #tpu.memory_space<vmem>>) target_semaphore(%arg11 : memref<!tpu.dma_semaphore, #tpu.memory_space<semaphore_mem>>)
      tpu.wait_dma2 semaphore(%arg11 : memref<!tpu.dma_semaphore, #tpu.memory_space<semaphore_mem>>) src(%arg6 : memref<64x32xf32, #tpu.memory_space<any>>) dst(%arg10 : memref<64x32xf32, #tpu.memory_space<vmem>>)
      %cst_40 = arith.constant 0.000000e+00 : f32
      %71 = vector.broadcast %cst_40 : f32 to vector<1x1x1xf32>
      %c0_41 = arith.constant 0 : index
      %c0_42 = arith.constant 0 : index
      %c0_43 = arith.constant 0 : index
      %72 = vector.load %arg7[%c0_41, %c0_42, %c0_43] : memref<1x1x1xf32, #tpu.memory_space<vmem>>, vector<1x1x1xf32>
      tpu.vector_store %arg7[%c0_41, %c0_42, %c0_43], %71 {strides = array<i32>} : memref<1x1x1xf32, #tpu.memory_space<vmem>>, vector<1x1x1xf32>,
      %cst_44 = arith.constant 0x7F800000 : f32
      %73 = vector.broadcast %cst_44 : f32 to vector<1x1x64xf32>
      %c0_45 = arith.constant 0 : index
      %c0_46 = arith.constant 0 : index
      %c0_47 = arith.constant 0 : index
      %74 = vector.load %arg8[%c0_45, %c0_46, %c0_47] : memref<1x1x64xf32, #tpu.memory_space<vmem>>, vector<1x1x64xf32>
      tpu.vector_store %arg8[%c0_45, %c0_46, %c0_47], %73 {strides = array<i32>} : memref<1x1x64xf32, #tpu.memory_space<vmem>>, vector<1x1x64xf32>,
      %cst_48 = arith.constant 0xFF800000 : f32
      %75 = vector.broadcast %cst_48 : f32 to vector<1x1x64xf32>
      %c0_49 = arith.constant 0 : index
      %c0_50 = arith.constant 0 : index
      %c0_51 = arith.constant 0 : index
      %76 = vector.load %arg9[%c0_49, %c0_50, %c0_51] : memref<1x1x64xf32, #tpu.memory_space<vmem>>, vector<1x1x64xf32>
      tpu.vector_store %arg9[%c0_49, %c0_50, %c0_51], %75 {strides = array<i32>} : memref<1x1x64xf32, #tpu.memory_space<vmem>>, vector<1x1x64xf32>,
    } else {
    }
    %c0 = arith.constant 0 : index
    %c0_1 = arith.constant 0 : index
    %3 = vector.load %arg5[%c0, %c0_1] : memref<64x32xf32, #tpu.memory_space<vmem>>, vector<64x32xf32>
    %c0_2 = arith.constant 0 : index
    %c0_3 = arith.constant 0 : index
    %4 = vector.load %arg10[%c0_2, %c0_3] : memref<64x32xf32, #tpu.memory_space<vmem>>, vector<64x32xf32>
    %cst = arith.constant dense<0.000000e+00> : vector<64x64xf32>
    %5 = tpu.matmul %3, %4, %cst {dimension_numbers = #tpu.dot_dimension_numbers<[1], [1], [0], [0], [0, 0, 1, 0], [], []>} : vector<64x32xf32>, vector<64x32xf32>, vector<64x64xf32> -> vector<64x64xf32>
    %c1_i32 = arith.constant 1 : i32
    %6 = arith.muli %arg0, %c1_i32 : i32
    %7 = arith.addi %6, %arg1 : i32
    %c64_i32 = arith.constant 64 : i32
    %8 = arith.muli %7, %c64_i32 : i32
    %9 = tpu.assume_multiple %8, 64 : i32
    %10 = tpu.iota {dimensions = array<i32: 0>} : vector<64x1xi32>
    %11 = vector.broadcast %9 : i32 to vector<64x1xi32>
    %12 = arith.addi %10, %11 : vector<64x1xi32>
    %13 = tpu.iota {dimensions = array<i32: 1>} : vector<1x64xi32>
    %14 = vector.broadcast %12 : vector<64x1xi32> to vector<64x64xi32>
    %15 = vector.broadcast %13 : vector<1x64xi32> to vector<64x64xi32>
    %16 = arith.cmpi eq, %14, %15 : vector<64x64xi32>
    %cst_4 = arith.constant 0xFF800000 : f32
    %17 = vector.broadcast %cst_4 : f32 to vector<64x64xf32>
    %18 = arith.select %16, %17, %5 : vector<64x64xi1>, vector<64x64xf32>
    %c0_5 = arith.constant 0 : index
    %19 = memref.load %arg2[%c0_5] : memref<1xf32, #tpu.memory_space<smem>>
    %cst_6 = arith.constant 2.000000e+00 : f32
    %20 = arith.mulf %cst_6, %19 : f32
    %c0_7 = arith.constant 0 : index
    %c0_8 = arith.constant 0 : index
    %21 = vector.load %arg3[%c0_7, %c0_8] : memref<64x1xf32, #tpu.memory_space<vmem>>, vector<64x1xf32>
    %c0_9 = arith.constant 0 : index
    %c0_10 = arith.constant 0 : index
    %22 = vector.load %arg4[%c0_9, %c0_10] : memref<1x64xf32, #tpu.memory_space<vmem>>, vector<1x64xf32>
    %23 = vector.broadcast %21 : vector<64x1xf32> to vector<64x64xf32>
    %24 = arith.cmpf ogt, %18, %23 : vector<64x64xf32>
    %cst_11 = arith.constant 0x7F800000 : f32
    %25 = vector.broadcast %cst_11 : f32 to vector<64x64xf32>
    %26 = arith.select %24, %18, %25 : vector<64x64xi1>, vector<64x64xf32>
    %cst_12 = arith.constant dense<0x7F800000> : vector<64xf32>
    %27 = vector.multi_reduction <minimumf>, %26, %cst_12 [1] : vector<64x64xf32> to vector<64xf32>
    %28 = vector.shape_cast %27 : vector<64xf32> to vector<64x1xf32>
    %cst_13 = arith.constant dense<0xFF800000> : vector<64xf32>
    %29 = vector.multi_reduction <maximumf>, %18, %cst_13 [1] : vector<64x64xf32> to vector<64xf32>
    %30 = vector.shape_cast %29 : vector<64xf32> to vector<64x1xf32>
    %cst_14 = arith.constant 1.000000e+00 : f32
    %31 = vector.broadcast %cst_14 : f32 to vector<64x1xf32>
    %32 = arith.minimumf %28, %31 : vector<64x1xf32>
    %33 = arith.minimumf %32, %30 : vector<64x1xf32>
    %34 = arith.subf %33, %21 : vector<64x1xf32>
    %35 = vector.broadcast %20 : f32 to vector<64x1xf32>
    %36 = arith.mulf %35, %34 : vector<64x1xf32>
    %cst_15 = arith.constant 0.000000e+00 : f32
    %37 = vector.broadcast %cst_15 : f32 to vector<64x1xf32>
    %38 = arith.maximumf %36, %37 : vector<64x1xf32>
    %39 = math.absf %36 : vector<64x1xf32>
    %cst_16 = arith.constant 0.000000e+00 : f32
    %40 = vector.broadcast %cst_16 : f32 to vector<64x1xf32>
    %41 = arith.subf %40, %39 : vector<64x1xf32>
    %42 = math.exp %41 : vector<64x1xf32>
    %cst_17 = arith.constant 1.000000e+00 : f32
    %43 = vector.broadcast %cst_17 : f32 to vector<64x1xf32>
    %44 = arith.addf %43, %42 : vector<64x1xf32>
    %45 = math.log %44 : vector<64x1xf32>
    %46 = arith.addf %38, %45 : vector<64x1xf32>
    %c0_18 = arith.constant 0 : index
    %c0_19 = arith.constant 0 : index
    %c0_20 = arith.constant 0 : index
    %47 = vector.load %arg7[%c0_18, %c0_19, %c0_20] : memref<1x1x1xf32, #tpu.memory_space<vmem>>, vector<1x1x1xf32>
    %48 = vector.shape_cast %46 : vector<64x1xf32> to vector<1x64x1xf32>
    %cst_21 = arith.constant dense<0.000000e+00> : vector<1xf32>
    %49 = vector.multi_reduction <add>, %48, %cst_21 [1, 2] : vector<1x64x1xf32> to vector<1xf32>
    %50 = vector.shape_cast %49 : vector<1xf32> to vector<1x1x1xf32>
    %51 = vector.extract %50[0, 0, 0] : f32 from vector<1x1x1xf32>
    %52 = vector.broadcast %51 : f32 to vector<1x1x1xf32>
    %53 = arith.addf %47, %52 : vector<1x1x1xf32>
    %c0_22 = arith.constant 0 : index
    %c0_23 = arith.constant 0 : index
    %c0_24 = arith.constant 0 : index
    %54 = vector.load %arg7[%c0_22, %c0_23, %c0_24] : memref<1x1x1xf32, #tpu.memory_space<vmem>>, vector<1x1x1xf32>
    tpu.vector_store %arg7[%c0_22, %c0_23, %c0_24], %53 {strides = array<i32>} : memref<1x1x1xf32, #tpu.memory_space<vmem>>, vector<1x1x1xf32>,
    %55 = vector.broadcast %22 : vector<1x64xf32> to vector<64x64xf32>
    %56 = arith.cmpf ogt, %18, %55 : vector<64x64xf32>
    %cst_25 = arith.constant 0x7F800000 : f32
    %57 = vector.broadcast %cst_25 : f32 to vector<64x64xf32>
    %58 = arith.select %56, %18, %57 : vector<64x64xi1>, vector<64x64xf32>
    %cst_26 = arith.constant dense<0x7F800000> : vector<64xf32>
    %59 = vector.multi_reduction <minimumf>, %58, %cst_26 [0] : vector<64x64xf32> to vector<64xf32>
    %60 = vector.shape_cast %59 : vector<64xf32> to vector<1x64xf32>
    %cst_27 = arith.constant dense<0xFF800000> : vector<64xf32>
    %61 = vector.multi_reduction <maximumf>, %18, %cst_27 [0] : vector<64x64xf32> to vector<64xf32>
    %62 = vector.shape_cast %61 : vector<64xf32> to vector<1x64xf32>
    %c0_28 = arith.constant 0 : index
    %c0_29 = arith.constant 0 : index
    %c0_30 = arith.constant 0 : index
    %63 = vector.load %arg8[%c0_28, %c0_29, %c0_30] : memref<1x1x64xf32, #tpu.memory_space<vmem>>, vector<1x1x64xf32>
    %64 = vector.shape_cast %60 : vector<1x64xf32> to vector<1x1x64xf32>
    %65 = arith.minimumf %63, %64 : vector<1x1x64xf32>
    %c0_31 = arith.constant 0 : index
    %c0_32 = arith.constant 0 : index
    %c0_33 = arith.constant 0 : index
    %66 = vector.load %arg8[%c0_31, %c0_32, %c0_33] : memref<1x1x64xf32, #tpu.memory_space<vmem>>, vector<1x1x64xf32>
    tpu.vector_store %arg8[%c0_31, %c0_32, %c0_33], %65 {strides = array<i32>} : memref<1x1x64xf32, #tpu.memory_space<vmem>>, vector<1x1x64xf32>,
    %c0_34 = arith.constant 0 : index
    %c0_35 = arith.constant 0 : index
    %c0_36 = arith.constant 0 : index
    %67 = vector.load %arg9[%c0_34, %c0_35, %c0_36] : memref<1x1x64xf32, #tpu.memory_space<vmem>>, vector<1x1x64xf32>
    %68 = vector.shape_cast %62 : vector<1x64xf32> to vector<1x1x64xf32>
    %69 = arith.maximumf %67, %68 : vector<1x1x64xf32>
    %c0_37 = arith.constant 0 : index
    %c0_38 = arith.constant 0 : index
    %c0_39 = arith.constant 0 : index
    %70 = vector.load %arg9[%c0_37, %c0_38, %c0_39] : memref<1x1x64xf32, #tpu.memory_space<vmem>>, vector<1x1x64xf32>
    tpu.vector_store %arg9[%c0_37, %c0_38, %c0_39], %69 {strides = array<i32>} : memref<1x1x64xf32, #tpu.memory_space<vmem>>, vector<1x1x64xf32>,
    return
  }
  func.func @transform_0(%arg0: i32, %arg1: i32) -> i32 {
    %c0_i32 = arith.constant 0 : i32
    %c0_i32_0 = arith.constant 0 : i32
    return %c0_i32 : i32
  }
  func.func @transform_1(%arg0: i32, %arg1: i32) -> (i32, i32) {
    %c1_i32 = arith.constant 1 : i32
    %0 = arith.muli %arg0, %c1_i32 : i32
    %1 = arith.addi %0, %arg1 : i32
    %c0_i32 = arith.constant 0 : i32
    %c0_i32_0 = arith.constant 0 : i32
    return %1, %c0_i32 : i32, i32
  }
  func.func @transform_2(%arg0: i32, %arg1: i32) -> (i32, i32) {
    %c0_i32 = arith.constant 0 : i32
    %c0_i32_0 = arith.constant 0 : i32
    %c0_i32_1 = arith.constant 0 : i32
    return %c0_i32, %c0_i32_0 : i32, i32
  }
  func.func @transform_3(%arg0: i32, %arg1: i32) -> (i32, i32) {
    %c1_i32 = arith.constant 1 : i32
    %0 = arith.muli %arg0, %c1_i32 : i32
    %1 = arith.addi %0, %arg1 : i32
    %c0_i32 = arith.constant 0 : i32
    %c0_i32_0 = arith.constant 0 : i32
    return %1, %c0_i32 : i32, i32
  }
  func.func @transform_5(%arg0: i32, %arg1: i32) -> (i32, i32, i32) {
    %c0_i32 = arith.constant 0 : i32
    %c0_i32_0 = arith.constant 0 : i32
    %c0_i32_1 = arith.constant 0 : i32
    return %arg0, %c0_i32, %c0_i32_0 : i32, i32, i32
  }
  func.func @transform_6(%arg0: i32, %arg1: i32) -> (i32, i32, i32) {
    %c0_i32 = arith.constant 0 : i32
    %c0_i32_0 = arith.constant 0 : i32
    %c0_i32_1 = arith.constant 0 : i32
    return %arg0, %c0_i32, %c0_i32_0 : i32, i32, i32
  }
  func.func @transform_7(%arg0: i32, %arg1: i32) -> (i32, i32, i32) {
    %c0_i32 = arith.constant 0 : i32
    %c0_i32_0 = arith.constant 0 : i32
    %c0_i32_1 = arith.constant 0 : i32
    return %arg0, %c0_i32, %c0_i32_0 : i32, i32, i32
  }
}

</mosaic_0001>

<bundles_post_ra>
// kernel: tpu_custom_call.1
= control target key start
LH: loop header
LB: loop body
LE: loop exit
PB: predicated region body
PF: predicated region fallthrough
CT: control target
= control target key end

     0   :  { %14 = vsyncpa [#allocation6], 0  ;;  %s1293_s0 = inlined_call_operand.<no memory space> [shape: f32[1], index: 0, kind: input, shape index: {}]   ;;  %s1294_s1 = inlined_call_operand.vmem [shape: f32[64,1], index: 1, kind: input, shape index: {}]   ;;  %s1295_s2 = inlined_call_operand.vmem [shape: f32[1,64], index: 2, kind: input, shape index: {}]   ;;  %s1296_s3 = inlined_call_operand.vmem [shape: f32[64,32], index: 3, kind: input, shape index: {}]   ;;  %s1297_s4 = inlined_call_operand.vmem [shape: f32[64,32], index: 4, kind: input, shape index: {}]   ;;  %s1298_s5 = inlined_call_operand.hbm [shape: f32[1,1,1], index: 5, kind: output, shape index: {0}]   ;;  %s1299_s6 = inlined_call_operand.hbm [shape: f32[1,1,64], index: 6, kind: output, shape index: {1}]   ;;  %s1300_s7 = inlined_call_operand.hbm [shape: f32[1,1,64], index: 7, kind: output, shape index: {2}]  }
   0x1   :  { %15 = vsyncpa [#allocation8], 0  ;;  %v104_v0 = vld [vmem:[%s1297_s4] sm:$0xff]  ;;  %v106_v1 = vld [vmem:[%s1297_s4 + $0x8] sm:$0xff] }
   0x2   :  { %v108_v2 = vld [vmem:[%s1297_s4 + $0x10] sm:$0xff]  ;;  %v110_v3 = vld [vmem:[%s1297_s4 + $0x18] sm:$0xff]  ;;  %v112_v4 = vld [vmem:[%s1297_s4 + $0x20] sm:$0xff] }
   0x3   :  { %v114_v5 = vld [vmem:[%s1297_s4 + $0x28] sm:$0xff]  ;;  %v116_v6 = vld [vmem:[%s1297_s4 + $0x30] sm:$0xff]  ;;  %v118_v7 = vld [vmem:[%s1297_s4 + $0x38] sm:$0xff] }
   0x4   :  { %127 = vsyncadd [#allocation3], 1024  ;;  %vm152_vm0 = vcmask 261120   ;;  %v787_v8 = vpack.c.bf16 %v106_v1, %v104_v0  ;;  %v793_v9 = vpack.c.bf16 %v110_v3, %v108_v2 }
   0x5   :  { %928 = dma.done.wait [#allocation3], 1024 }
   0x6   :  { %929 = vsyncadd [#allocation3], 4294966272  ;;  %v934_v11 = vmov 0   ;;  %v136_v12 = vld [vmem:[%s1296_s3] sm:$0xff]  ;;  %v799_v14 = vpack.c.bf16 %v114_v5, %v112_v4  ;;  %v1034_v15 = vld [vmem:[%s1294_s1 + $0x10] sm:$0xff]  ;;  %v805_v20 = vpack.c.bf16 %v118_v7, %v116_v6  ;;  %vm133_vm2 = vcmask 516096  }
   0x7   :  { %vm1007_vm1 = vmpackc.low %vm152_vm0, %vm152_vm0  ;;  %829 = vset.pattern.permute.xlu1 %v934_v11  ;;  %828 = vset.pattern.permute.xlu0 %v934_v11  ;;  %v140_v13 = vld [vmem:[%s1296_s3 + $0x20] sm:$0xff]  ;;  %v1049_v17 = vld [vmem:[%s1294_s1 + $0x18] sm:$0xff]  ;;  %v935_v30 = vmov -inf   ;;  %v936_v31 = vmov inf   ;;  %v308_v32 = vlaneseq  ;;  %vm411_vm7 = vcmask 523264   ;;  %s345_s25 = smul.f32 2.0, %s1293_s0 }
   0x8   :  { %789 = vmatprep.subr.msk.bf16.mxu0 %vm1007_vm1, %v787_v8  ;;  %811 = vmatprep.subr.msk.bf16.mxu1 %vm1007_vm1, %v787_v8  ;;  %v1040_v16 = vld [vmem:[%s1294_s1] sm:$0xff]  ;;  %v1060_v18 = vld [vmem:[%s1294_s1 + $0x8] sm:$0xff]  ;;  %v1081_v22 = vld [vmem:[%s1294_s1 + $0x38] sm:$0xff]  ;;  %135 = vst.msk [vmem:[#allocation9] sm:$0x1] %vm133_vm2, %v935_v30  ;;  %s938_s0 = smov [#allocation7]  }
   0x9   :  { %792 = vmatpush3.bf16.xpose.msk.msra.mxu0 %vm1007_vm1, %v787_v8  ;;  %815 = vmatpush3.bf16.xpose.msk.msra.mxu1 %vm1007_vm1, %v787_v8  ;;  %v1065_v19 = vld [vmem:[%s1294_s1 + $0x28] sm:$0xff]  ;;  %v1072_v21 = vld [vmem:[%s1294_s1 + $0x20] sm:$0xff]  ;;  %v1092_v23 = vld [vmem:[%s1294_s1 + $0x30] sm:$0xff]  ;;  %134 = vst.msk [vmem:[#allocation7] sm:$0x1] %vm133_vm2, %v936_v31  ;;  %v309_v33 = vshrl.u32 %v308_v32, 7 }
   0xa   :  { %795 = vmatprep.subr.msk.bf16.mxu0 %vm1007_vm1, %v793_v9  ;;  %812 = vmatprep.subr.msk.bf16.mxu1 %vm1007_vm1, %v793_v9  ;;  %v137_v24 = vld [vmem:[%s1296_s3 + $0x8] sm:$0xff]  ;;  %v138_v26 = vld [vmem:[%s1296_s3 + $0x10] sm:$0xff]  ;;  %v139_v28 = vld [vmem:[%s1296_s3 + $0x18] sm:$0xff]  ;;  %v327_v35 = vand.u32 127, %v308_v32  ;;  %s674_s26 = sshll.u32 %s938_s0, 4  ;;  %s675_s26 = int_to_ptr.vmem [resolvable:$true] %s674_s26 }
   0xb   :  { %775 = vmatprep.mubr.msk.f32.mxu0 %vm152_vm0, %v136_v12  ;;  %781 = vmatprep.mubr.msk.f32.mxu1 %vm152_vm0, %v140_v13  ;;  %v141_v25 = vld [vmem:[%s1296_s3 + $0x28] sm:$0xff]  ;;  %v142_v27 = vld [vmem:[%s1296_s3 + $0x30] sm:$0xff]  ;;  %v143_v29 = vld [vmem:[%s1296_s3 + $0x38] sm:$0xff]  ;;  %v310_v34 = vadd.s32 8, %v309_v33  ;;  %v314_v36 = vadd.s32 40, %v309_v33  ;;  %v313_v37 = vadd.s32 32, %v309_v33  ;;  %p867_p1 = scmp.lt.s32.totalorder %s675_s26, %s675_s26 }
   0xc   :  { %367 = vperm.xlu1 %829, %v1034_v15   ;;  %357 = vperm.xlu0 %828, %v1040_v16   ;;  %v316_v38 = vadd.s32 56, %v309_v33  ;;  %v312_v39 = vadd.s32 24, %v309_v33  ;;  %v311_v41 = vadd.s32 16, %v309_v33  ;;  %v315_v42 = vadd.s32 48, %v309_v33  ;;  %v741_v43 = vld [vmem:[%s1295_s2] ss:$0 sm:$0xff] }
   0xd   :  { %vm329_vm3 = vcmp.eq.s32.totalorder %v310_v34, %v327_v35  ;;  %vm333_vm4 = vcmp.eq.s32.totalorder %v314_v36, %v327_v35  ;;  %vm328_vm5 = vcmp.eq.s32.totalorder %v309_v33, %v327_v35  ;;  %vm332_vm6 = vcmp.eq.s32.totalorder %v313_v37, %v327_v35  ;;  %s862_s27 = scalar_lea.vmem %s675_s26, 16  ;;  %s866_s28 = scalar_lea.vmem %s675_s26, 32 }
   0xe   :  { %vm335_vm8 = vcmp.eq.s32.totalorder %v316_v38, %v327_v35  ;;  %vm331_vm9 = vcmp.eq.s32.totalorder %v312_v39, %v327_v35  ;;  %vm330_vm10 = vcmp.eq.s32.totalorder %v311_v41, %v327_v35  ;;  %vm334_vm11 = vcmp.eq.s32.totalorder %v315_v42, %v327_v35  ;;  %p863_p0 = scmp.ne.s32.totalorder %s675_s26, %s862_s27  ;;  %p868_p2 = scmp.lt.s32.totalorder %s866_s28, %s862_s27 }
  0x10   :  { %372 = vperm.xlu1 %829, %v1049_v17   ;;  %362 = vperm.xlu0 %828, %v1060_v18   ;;  %p869_p3 = por %p868_p2, %p867_p1 }
  0x11   :  { %798 = vmatpush3.bf16.xpose.msk.msra.mxu0 %vm1007_vm1, %v793_v9  ;;  %816 = vmatpush3.bf16.xpose.msk.msra.mxu1 %vm1007_vm1, %v793_v9 }
  0x12   :  { %801 = vmatprep.subr.msk.bf16.mxu0 %vm1007_vm1, %v799_v14  ;;  %813 = vmatprep.subr.msk.bf16.mxu1 %vm1007_vm1, %v799_v14  ;;  %p870_p4 = pnand %p869_p3, %p863_p0 }
  0x14   :  { %382 = vperm.xlu1 %829, %v1065_v19   ;;  %377 = vperm.xlu0 %828, %v1072_v21  }
  0x18   :  { %392 = vperm.xlu1 %829, %v1081_v22   ;;  %387 = vperm.xlu0 %828, %v1092_v23  }
  0x19   :  { %804 = vmatpush3.bf16.xpose.msk.msra.mxu0 %vm1007_vm1, %v799_v14  ;;  %817 = vmatpush3.bf16.xpose.msk.msra.mxu1 %vm1007_vm1, %v799_v14 }
  0x1a   :  { %807 = vmatprep.subr.msk.bf16.mxu0 %vm1007_vm1, %v805_v20  ;;  %814 = vmatprep.subr.msk.bf16.mxu1 %vm1007_vm1, %v805_v20 }
  0x21   :  { %810 = vmatpush3.bf16.xpose.msk.msra.mxu0 %vm1007_vm1, %v805_v20  ;;  %818 = vmatpush3.bf16.xpose.msk.msra.mxu1 %vm1007_vm1, %v805_v20 }
  0x28   :  { %776 = vmatmul.mubr.msk.f32.vlgmr.msra.gmra.mrb[0].mxu0 %vm152_vm0, %v137_v24  ;;  %782 = vmatmul.mubr.msk.f32.vlgmr.msra.gmra.mrb[0].mxu1 %vm152_vm0, %v141_v25 }
  0x29   :  { %778 = vmatprep.mubr.msk.f32.mxu0 %vm152_vm0, %v138_v26  ;;  %784 = vmatprep.mubr.msk.f32.mxu1 %vm152_vm0, %v142_v27 }
  0x2c   :  { %779 = vmatmul.mubr.msk.f32.gmra.mrb[2].mxu0 %vm152_vm0, %v139_v28  ;;  %785 = vmatmul.mubr.msk.f32.gmra.mrb[2].mxu1 %vm152_vm0, %v143_v29 }
  0x8b   :  { %v1125_v40 = vpop.permute.xlu1 %367  ;;  %v358_v50 = vpop.permute.xlu0 %357 }
  0x8f   :  { %v1137_v53 = vpop.permute.xlu1 %372  ;;  %v363_v10 = vpop.permute.xlu0 %362 }
  0x93   :  { %v383_v25 = vpop.permute.xlu1 %382  ;;  %v378_v36 = vpop.permute.xlu0 %377 }
  0xfb   :  { %v777_v44 = vpop.f32.mrb[0].mxu0  ;;  %v783_v45 = vpop.f32.mrb[0].mxu1 }
  0xfc   :  { %v337_v46 = vsel %vm329_vm3, -inf, %v777_v44  ;;  %v1130_v47 = vsel %vm333_vm4, -inf, %v783_v45  ;;  %v267_v48 = vpop.f32.mrb[1].mxu0  ;;  %v287_v49 = vpop.f32.mrb[1].mxu1 }
  0xfd   :  { %vm602_vm12 = vcmp.gt.f32.partialorder %v337_v46, %v741_v43  ;;  %vm606_vm13 = vcmp.gt.f32.partialorder %v1130_v47, %v741_v43  ;;  %v336_v51 = vsel %vm328_vm5, -inf, %v267_v48  ;;  %v1135_v52 = vsel %vm332_vm6, -inf, %v287_v49 }
  0xfe   :  { %v610_v54 = vsel %vm602_vm12, %v337_v46, inf  ;;  %v614_v55 = vsel %vm606_vm13, %v1130_v47, inf  ;;  %vm601_vm14 = vcmp.gt.f32.partialorder %v336_v51, %v741_v43  ;;  %vm605_vm15 = vcmp.gt.f32.partialorder %v1135_v52, %v741_v43 }
  0xff   :  { %v618_v56 = vsel %vm411_vm7, %v610_v54, inf  ;;  %v623_v57 = vsel %vm411_vm7, %v614_v55, inf  ;;  %v609_v58 = vsel %vm601_vm14, %v336_v51, inf  ;;  %v613_v59 = vsel %vm605_vm15, %v1135_v52, inf  ;;  %v786_v60 = vpop.f32.mrb[2].mxu1  ;;  %v780_v61 = vpop.f32.mrb[2].mxu0 }
 0x100   :  { %v624_v62 = vmin.f32 %v618_v56, %v623_v57  ;;  %v617_v63 = vsel %vm411_vm7, %v609_v58, inf  ;;  %v621_v0 = vsel %vm411_vm7, %v613_v59, inf  ;;  %v439_v1 = vsel %vm411_vm7, %v337_v46, -inf  ;;  %v277_v2 = vpop.f32.mrb[3].mxu0  ;;  %v297_v3 = vpop.f32.mrb[3].mxu1 }
 0x101   :  { %v622_v4 = vmin.f32 %v617_v63, %v621_v0  ;;  %440 = vmax.xlane.f32.xlu1 %v439_v1  ;;  %v1148_v5 = vsel %vm335_vm8, -inf, %v786_v60  ;;  %v436_v6 = vsel %vm411_vm7, %v336_v51, -inf  ;;  %v339_v7 = vsel %vm331_vm9, -inf, %v780_v61  ;;  %v393_v63 = vpop.permute.xlu1 %392 }
 0x102   :  { %vm608_vm0 = vcmp.gt.f32.partialorder %v1148_v5, %v741_v43  ;;  %437 = vmax.xlane.f32.xlu0 %v436_v6  ;;  %vm604_vm1 = vcmp.gt.f32.partialorder %v339_v7, %v741_v43  ;;  %v338_v8 = vsel %vm330_vm10, -inf, %v277_v2  ;;  %v1155_v9 = vsel %vm334_vm11, -inf, %v297_v3  ;;  %v651_v2 = vld [vmem:[#allocation7] sm:$0x1] }
 0x103   :  { %v629_v11 = vmin.f32 %v622_v4, %v624_v62  ;;  %v616_v12 = vsel %vm608_vm0, %v1148_v5, inf  ;;  %v612_v13 = vsel %vm604_vm1, %v339_v7, inf  ;;  %vm603_vm3 = vcmp.gt.f32.partialorder %v338_v8, %v741_v43 }
 0x104   :  { %v627_v14 = vsel %vm411_vm7, %v616_v12, inf  ;;  %v620_v20 = vsel %vm411_vm7, %v612_v13, inf  ;;  %v611_v24 = vsel %vm603_vm3, %v338_v8, inf  ;;  %vm607_vm4 = vcmp.gt.f32.partialorder %v1155_v9, %v741_v43 }
 0x105   :  { %v628_v26 = vmin.f32 %v620_v20, %v627_v14  ;;  %v619_v27 = vsel %vm411_vm7, %v611_v24, inf  ;;  %v615_v28 = vsel %vm607_vm4, %v1155_v9, inf  ;;  %v448_v29 = vsel %vm411_vm7, %v1135_v52, -inf  ;;  %v655_v20 = vld [vmem:[#allocation9] sm:$0x1] }
 0x106   :  { %v625_v30 = vsel %vm411_vm7, %v615_v28, inf  ;;  %449 = vmax.xlane.f32.xlu1 %v448_v29  ;;  %v638_v31 = vmax.f32 %v436_v6, %v448_v29  ;;  %vm400_vm5 = vcmp.gt.f32.partialorder %v1130_v47, %v383_v25  ;;  %vm396_vm6 = vcmp.gt.f32.partialorder %v337_v46, %v363_v10 }
 0x107   :  { %v626_v32 = vmin.f32 %v619_v27, %v625_v30  ;;  %v408_v33 = vsel %vm400_vm5, %v1130_v47, inf  ;;  %v404_v34 = vsel %vm396_vm6, %v337_v46, inf  ;;  %vm395_vm8 = vcmp.gt.f32.partialorder %v336_v51, %v358_v50 }
 0x108   :  { %v427_v35 = vsel %vm411_vm7, %v408_v33, inf  ;;  %v415_v38 = vsel %vm411_vm7, %v404_v34, inf  ;;  %v403_v39 = vsel %vm395_vm8, %v336_v51, inf  ;;  %vm399_vm9 = vcmp.gt.f32.partialorder %v1135_v52, %v378_v36 }
 0x109   :  { %v630_v37 = vmin.f32 %v626_v32, %v628_v26  ;;  %428 = vmin.xlane.f32.xlu0 %v427_v35  ;;  %v442_v41 = vsel %vm411_vm7, %v338_v8, -inf  ;;  %v451_v42 = vsel %vm411_vm7, %v1130_v47, -inf  ;;  %v412_v45 = vsel %vm411_vm7, %v403_v39, inf }
 0x10a   :  { %416 = vmin.xlane.f32.xlu1 %v415_v38  ;;  %v639_v44 = vmax.f32 %v439_v1, %v451_v42  ;;  %v445_v46 = vsel %vm411_vm7, %v339_v7, -inf  ;;  %v454_v48 = vsel %vm411_vm7, %v1155_v9, -inf  ;;  %v407_v50 = vsel %vm399_vm9, %v1135_v52, inf }
 0x10b   :  { %v631_v43 = vmin.f32 %v629_v11, %v630_v37  ;;  %v640_v54 = vmax.f32 %v442_v41, %v454_v48  ;;  %vm398_vm10 = vcmp.gt.f32.partialorder %v339_v7, %v1137_v53  ;;  %v457_v47 = vsel %vm411_vm7, %v1148_v5, -inf }
 0x10c   :  { %v642_v51 = vmax.f32 %v638_v31, %v639_v44  ;;  %v641_v56 = vmax.f32 %v445_v46, %v457_v47  ;;  %v424_v57 = vsel %vm411_vm7, %v407_v50, inf  ;;  %v406_v58 = vsel %vm398_vm10, %v339_v7, inf  ;;  %v388_v7 = vpop.permute.xlu0 %387 }
 0x10d   :  { %v632_v49 = vrot.slane %v631_v43, 4  ;;  %413 = vmin.xlane.f32.xlu0 %v412_v45  ;;  %vm397_vm11 = vcmp.gt.f32.partialorder %v338_v8, %v1125_v40  ;;  %v421_v62 = vsel %vm411_vm7, %v406_v58, inf  ;;  %vm402_vm12 = vcmp.gt.f32.partialorder %v1148_v5, %v393_v63 }
 0x10e   :  { %446 = vmax.xlane.f32.xlu1 %v445_v46  ;;  %v643_v59 = vmax.f32 %v640_v54, %v641_v56  ;;  %v405_v53 = vsel %vm397_vm11, %v338_v8, inf  ;;  %v410_v40 = vsel %vm402_vm12, %v1148_v5, inf  ;;  %vm401_vm13 = vcmp.gt.f32.partialorder %v1155_v9, %v388_v7 }
 0x10f   :  { %v633_v55 = vmin.f32 %v631_v43, %v632_v49  ;;  %v418_v6 = vsel %vm411_vm7, %v405_v53, inf  ;;  %v433_v12 = vsel %vm411_vm7, %v410_v40, inf  ;;  %v409_v13 = vsel %vm401_vm13, %v1155_v9, inf }
 0x110   :  { %v644_v52 = vmax.f32 %v642_v51, %v643_v59  ;;  %v430_v25 = vsel %vm411_vm7, %v409_v13, inf  ;;  %v1197_v33 = vstv %s345_s25  ;;  %vm131_vm7 = vcmask 0  }
 0x111   :  { %425 = vmin.xlane.f32.xlu0 %v424_v57  ;;  %v634_v60 = vrot.slane %v633_v55, 2 }
 0x112   :  { %443 = vmax.xlane.f32.xlu1 %v442_v41  ;;  %v645_v0 = vrot.slane %v644_v52, 4 }
 0x113   :  { %v635_v61 = vmin.f32 %v633_v55, %v634_v60 }
 0x114   :  { %v646_v3 = vmax.f32 %v644_v52, %v645_v0 }
 0x115   :  { %422 = vmin.xlane.f32.xlu0 %v421_v62  ;;  %v636_v1 = vrot.slane %v635_v61, 1 }
 0x116   :  { %452 = vmax.xlane.f32.xlu1 %v451_v42  ;;  %v647_v10 = vrot.slane %v646_v3, 2 }
 0x117   :  { %v637_v4 = vmin.f32 %v635_v61, %v636_v1 }
 0x118   :  { %v648_v8 = vmax.f32 %v646_v3, %v647_v10 }
 0x119   :  { %419 = vmin.xlane.f32.xlu0 %v418_v6  ;;  %v652_v11 = vmin.f32 %v651_v2, %v637_v4 }
 0x11a   :  { %455 = vmax.xlane.f32.xlu1 %v454_v48  ;;  %v649_v14 = vrot.slane %v648_v8, 1 }
 0x11b   :  { %654 = vst.msk [vmem:[#allocation7] sm:$0x1] %vm133_vm2, %v652_v11 }
 0x11c   :  { %v650_v24 = vmax.f32 %v648_v8, %v649_v14 }
 0x11d   :  { %434 = vmin.xlane.f32.xlu0 %v433_v12 }
 0x11e   :  { %v656_v5 = vmax.f32 %v655_v20, %v650_v24 }
 0x120   :  { %657 = vst.msk [vmem:[#allocation9] sm:$0x1] %vm133_vm2, %v656_v5  ;;  %vm566_vm2 = vcmask 7168  }
 0x121   :  { %431 = vmin.xlane.f32.xlu0 %v430_v25 }
 0x125   :  { %458 = vmax.xlane.f32.xlu0 %v457_v47 }
 0x18e   :  { %v441_v26 = vpop.xlane.xlu1 %440 }
 0x18f   :  { %v438_v27 = vpop.xlane.xlu0 %437 }
 0x193   :  { %v450_v28 = vpop.xlane.xlu1 %449 }
 0x196   :  { %v429_v29 = vpop.xlane.xlu0 %428 }
 0x197   :  { %v417_v30 = vpop.xlane.xlu1 %416  ;;  %v465_v48 = vmin.f32 %v429_v29, 1.0 }
 0x198   :  { %v461_v9 = vmin.f32 %v417_v30, 1.0 }
 0x19a   :  { %v469_v31 = vmin.f32 %v461_v9, %v441_v26  ;;  %v414_v32 = vpop.xlane.xlu0 %413 }
 0x19b   :  { %v460_v34 = vmin.f32 %v414_v32, 1.0  ;;  %v447_v35 = vpop.xlane.xlu1 %446 }
 0x19c   :  { %v477_v36 = vsub.f32 %v469_v31, %v1060_v18 }
 0x19d   :  { %v468_v37 = vmin.f32 %v460_v34, %v438_v27 }
 0x19e   :  { %v1201_v38 = vmul.f32 %v1197_v33, %v477_v36  ;;  %v426_v39 = vpop.xlane.xlu0 %425 }
 0x19f   :  { %v476_v41 = vsub.f32 %v468_v37, %v1040_v16  ;;  %v464_v42 = vmin.f32 %v426_v39, 1.0  ;;  %v444_v43 = vpop.xlane.xlu1 %443 }
 0x1a0   :  { %v502_v44 = vand.u32 2147483647, %v1201_v38 }
 0x1a1   :  { %v1206_v45 = vmul.f32 %v1197_v33, %v476_v41  ;;  %v472_v46 = vmin.f32 %v464_v42, %v450_v28 }
 0x1a2   :  { %v510_v49 = vsub.f32 0.0, %v502_v44  ;;  %v423_v50 = vpop.xlane.xlu0 %422 }
 0x1a3   :  { %v501_v18 = vand.u32 2147483647, %v1206_v45  ;;  %v480_v51 = vsub.f32 %v472_v46, %v1072_v21  ;;  %v463_v54 = vmin.f32 %v423_v50, 1.0  ;;  %v453_v47 = vpop.xlane.xlu1 %452 }
 0x1a4   :  { %v519_v55 = vmul.f32 1.442695, %v510_v49  ;;  %v473_v56 = vmin.f32 %v465_v48, %v453_v47 }
 0x1a5   :  { %v509_v16 = vsub.f32 0.0, %v501_v18  ;;  %v1211_v57 = vmul.f32 %v1197_v33, %v480_v51  ;;  %v471_v58 = vmin.f32 %v463_v54, %v447_v35 }
 0x1a6   :  { %v481_v59 = vsub.f32 %v473_v56, %v1065_v19  ;;  %v420_v60 = vpop.xlane.xlu0 %419  ;;  %830 = vpow2.f32 %v519_v55  ;;  %v494_v56 = vmax.f32 %v1201_v38, 0.0 }
 0x1a7   :  { %v517_v52 = vmul.f32 1.442695, %v509_v16  ;;  %v505_v61 = vand.u32 2147483647, %v1211_v57  ;;  %v479_v62 = vsub.f32 %v471_v58, %v1049_v17  ;;  %v462_v63 = vmin.f32 %v420_v60, 1.0  ;;  %v456_v14 = vpop.xlane.xlu1 %455 }
 0x1a8   :  { %v1217_v21 = vmul.f32 %v1197_v33, %v481_v59  ;;  %v493_v16 = vmax.f32 %v1206_v45, 0.0 }
 0x1a9   :  { %832 = vpow2.f32 %v517_v52  ;;  %v513_v53 = vsub.f32 0.0, %v505_v61  ;;  %v1220_v0 = vmul.f32 %v1197_v33, %v479_v62  ;;  %v470_v2 = vmin.f32 %v462_v63, %v444_v43 }
 0x1aa   :  { %v506_v1 = vand.u32 2147483647, %v1217_v21  ;;  %v435_v19 = vpop.xlane.xlu0 %434 }
 0x1ab   :  { %v504_v3 = vand.u32 2147483647, %v1220_v0  ;;  %v525_v4 = vmul.f32 1.442695, %v513_v53  ;;  %v478_v17 = vsub.f32 %v470_v2, %v1034_v15  ;;  %v467_v20 = vmin.f32 %v435_v19, 1.0 }
 0x1ac   :  { %v514_v6 = vsub.f32 0.0, %v506_v1  ;;  %v496_v2 = vmax.f32 %v1220_v0, 0.0 }
 0x1ad   :  { %v512_v7 = vsub.f32 0.0, %v504_v3  ;;  %v1226_v10 = vmul.f32 %v1197_v33, %v478_v17  ;;  %834 = vpow2.f32 %v525_v4 }
 0x1ae   :  { %v527_v40 = vmul.f32 1.442695, %v514_v6  ;;  %v432_v11 = vpop.xlane.xlu0 %431  ;;  %v497_v6 = vmax.f32 %v1211_v57, 0.0 }
 0x1af   :  { %v523_v8 = vmul.f32 1.442695, %v512_v7  ;;  %v466_v12 = vmin.f32 %v432_v11, 1.0  ;;  %v503_v13 = vand.u32 2147483647, %v1226_v10  ;;  %v495_v19 = vmax.f32 %v1226_v10, 0.0 }
 0x1b0   :  { %v831_v25 = vpop.eup %830 }
 0x1b1   :  { %836 = vpow2.f32 %v523_v8  ;;  %v474_v24 = vmin.f32 %v466_v12, %v456_v14  ;;  %v511_v5 = vsub.f32 0.0, %v503_v13  ;;  %v534_v30 = vadd.f32 1.0, %v831_v25 }
 0x1b2   :  { %838 = vpow2.f32 %v527_v40  ;;  %v459_v26 = vpop.xlane.xlu0 %458  ;;  %v498_v8 = vmax.f32 %v1217_v21, 0.0 }
 0x1b3   :  { %v833_v15 = vpop.eup %832  ;;  %v482_v27 = vsub.f32 %v474_v24, %v1092_v23  ;;  %v475_v28 = vmin.f32 %v467_v20, %v459_v26  ;;  %v521_v29 = vmul.f32 1.442695, %v511_v5 }
 0x1b4   :  { %v533_v32 = vadd.f32 1.0, %v833_v15 }
 0x1b5   :  { %v1231_v9 = vmul.f32 %v1197_v33, %v482_v27  ;;  %v483_v31 = vsub.f32 %v475_v28, %v1081_v22  ;;  %840 = vpow2.f32 %v521_v29 }
 0x1b6   :  { %842 = vlog2.f32 %v534_v30 }
 0x1b7   :  { %v507_v34 = vand.u32 2147483647, %v1231_v9  ;;  %v1236_v35 = vmul.f32 %v1197_v33, %v483_v31  ;;  %v835_v23 = vpop.eup %834  ;;  %844 = vlog2.f32 %v533_v32  ;;  %v499_v5 = vmax.f32 %v1231_v9, 0.0 }
 0x1b8   :  { %v537_v22 = vadd.f32 1.0, %v835_v23  ;;  %v937_v9 = vmov 0.0  }
 0x1b9   :  { %v515_v36 = vsub.f32 0.0, %v507_v34  ;;  %v508_v37 = vand.u32 2147483647, %v1236_v35  ;;  %v500_v15 = vmax.f32 %v1236_v35, 0.0  ;;  %132 = vst.msk [vmem:[#allocation5] sm:$0x1] %vm131_vm7, %v937_v9 }
 0x1bb   :  { %v837_v39 = vpop.eup %836  ;;  %v529_v41 = vmul.f32 1.442695, %v515_v36  ;;  %v516_v42 = vsub.f32 0.0, %v508_v37 }
 0x1bc   :  { %v839_v43 = vpop.eup %838  ;;  %v536_v44 = vadd.f32 1.0, %v837_v39 }
 0x1bd   :  { %v531_v46 = vmul.f32 1.442695, %v516_v42  ;;  %v538_v48 = vadd.f32 1.0, %v839_v43 }
 0x1be   :  { %846 = vlog2.f32 %v536_v44 }
 0x1bf   :  { %848 = vpow2.f32 %v529_v41  ;;  %v841_v49 = vpop.eup %840 }
 0x1c0   :  { %850 = vpow2.f32 %v531_v46  ;;  %v535_v33 = vadd.f32 1.0, %v841_v49  ;;  %v843_v50 = vpop.eup %842 }
 0x1c1   :  { %852 = vlog2.f32 %v537_v22  ;;  %v845_v18 = vpop.eup %844  ;;  %v544_v51 = vmul.f32 0.6931472, %v843_v50 }
 0x1c2   :  { %854 = vlog2.f32 %v538_v48  ;;  %v542_v54 = vmul.f32 0.6931472, %v845_v18 }
 0x1c3   :  { %856 = vlog2.f32 %v535_v33  ;;  %v558_v60 = vadd.f32 %v544_v51, %v494_v56 }
 0x1c4   :  { %v557_v52 = vadd.f32 %v542_v54, %v493_v16 }
 0x1c5   :  { %v568_v38 = vsel %vm566_vm2, %v558_v60, 0.0 }
 0x1c6   :  { %v567_v45 = vsel %vm566_vm2, %v557_v52, 0.0 }
 0x1c7   :  { %v569_v11 = vadd.f32 %v568_v38, %v567_v45 }
 0x1c8   :  { %v847_v47 = vpop.eup %846 }
 0x1c9   :  { %v849_v55 = vpop.eup %848  ;;  %v548_v53 = vmul.f32 0.6931472, %v847_v47 }
 0x1ca   :  { %v851_v58 = vpop.eup %850  ;;  %v539_v59 = vadd.f32 1.0, %v849_v55 }
 0x1cb   :  { %v540_v61 = vadd.f32 1.0, %v851_v58  ;;  %v853_v62 = vpop.eup %852  ;;  %v560_v17 = vadd.f32 %v548_v53, %v496_v2 }
 0x1cc   :  { %858 = vlog2.f32 %v539_v59  ;;  %v855_v63 = vpop.eup %854  ;;  %v550_v4 = vmul.f32 0.6931472, %v853_v62 }
 0x1cd   :  { %860 = vlog2.f32 %v540_v61  ;;  %v857_v1 = vpop.eup %856  ;;  %v552_v40 = vmul.f32 0.6931472, %v855_v63  ;;  %v572_v10 = vsel %vm566_vm2, %v560_v17, 0.0 }
 0x1ce   :  { %v546_v3 = vmul.f32 0.6931472, %v857_v1  ;;  %v561_v12 = vadd.f32 %v550_v4, %v497_v6 }
 0x1cf   :  { %v562_v14 = vadd.f32 %v552_v40, %v498_v8 }
 0x1d0   :  { %v559_v7 = vadd.f32 %v546_v3, %v495_v19  ;;  %v574_v57 = vsel %vm566_vm2, %v561_v12, 0.0 }
 0x1d1   :  { %v576_v29 = vsel %vm566_vm2, %v562_v14, 0.0 }
 0x1d2   :  { %v570_v13 = vsel %vm566_vm2, %v559_v7, 0.0 }
 0x1d3   :  { %v571_v0 = vadd.f32 %v570_v13, %v569_v11 }
 0x1d5   :  { %v573_v24 = vadd.f32 %v572_v10, %v571_v0 }
 0x1d6   :  { %v859_v20 = vpop.eup %858 }
 0x1d7   :  { %v861_v25 = vpop.eup %860  ;;  %v554_v26 = vmul.f32 0.6931472, %v859_v20  ;;  %v575_v28 = vadd.f32 %v574_v57, %v573_v24 }
 0x1d8   :  { %v556_v27 = vmul.f32 0.6931472, %v861_v25 }
 0x1d9   :  { %v563_v21 = vadd.f32 %v554_v26, %v499_v5  ;;  %v577_v31 = vadd.f32 %v576_v29, %v575_v28 }
 0x1da   :  { %v564_v30 = vadd.f32 %v556_v27, %v500_v15 }
 0x1db   :  { %v578_v32 = vsel %vm566_vm2, %v563_v21, 0.0 }
 0x1dc   :  { %v579_v34 = vadd.f32 %v578_v32, %v577_v31  ;;  %v580_v36 = vsel %vm566_vm2, %v564_v30, 0.0 }
 0x1de   :  { %v581_v37 = vadd.f32 %v580_v36, %v579_v34 }
 0x1e0   :  { %582 = vadd.xlane.f32.xlu1 %v581_v37 }
 0x1e1   :  { %873 = shalt.err (!%p870_p4)
}
 0x1e2   :  { %s874_s8 = scalar_lea.hbm %s1299_s6, 16 }
 0x1e3   :  { %p875_p5 = scmp.ne.s32.totalorder %s1299_s6, %s874_s8  ;;  %p878_p6 = scmp.lt.u32.totalorder %s874_s8, %s1299_s6 }
 0x1e5   :  { %p880_p7 = pnand %p878_p6, %p875_p5 }
 0x1e7   :  { %883 = shalt.err (!%p880_p7)
}
 0x1e8   :  { %677 = dma.vmem_to_hbm [thread:$0]  %s675_s26, 16, %s1299_s6, [#allocation8]  }
 0x1e9   :  { %s939_s15 = smov [#allocation9]  }
 0x1ea   :  { %s684_s16 = sshll.u32 %s939_s15, 4  ;;  %s685_s16 = int_to_ptr.vmem [resolvable:$true] %s684_s16 }
 0x1eb   :  { %s884_s4 = scalar_lea.vmem %s685_s16, 16  ;;  %s888_s17 = scalar_lea.vmem %s685_s16, 32 }
 0x1ec   :  { %p885_p8 = scmp.ne.s32.totalorder %s685_s16, %s884_s4  ;;  %p889_p9 = scmp.lt.s32.totalorder %s685_s16, %s685_s16 }
 0x1ed   :  { %p890_p10 = scmp.lt.s32.totalorder %s888_s17, %s884_s4 }
 0x1ef   :  { %p891_p11 = por %p890_p10, %p889_p9 }
 0x1f1   :  { %p892_p12 = pnand %p891_p11, %p885_p8 }
 0x1f3   :  { %895 = shalt.err (!%p892_p12)
}
 0x1f4   :  { %s896_s19 = scalar_lea.hbm %s1300_s7, 16 }
 0x1f5   :  { %p897_p13 = scmp.ne.s32.totalorder %s1300_s7, %s896_s19  ;;  %p900_p0 = scmp.lt.u32.totalorder %s896_s19, %s1300_s7 }
 0x1f7   :  { %p902_p1 = pnand %p900_p0, %p897_p13 }
 0x1f9   :  { %905 = shalt.err (!%p902_p1)
}
 0x1fa   :  { %687 = dma.vmem_to_hbm [thread:$0]  %s685_s16, 16, %s1300_s7, [#allocation8]   ;;  %v565_v46 = vld [vmem:[#allocation5] sm:$0x1] }
 0x1fb   :  { %s940_s2 = smov [#allocation5]  }
 0x1fc   :  { %s664_s24 = sshll.u32 %s940_s2, 4  ;;  %s665_s24 = int_to_ptr.vmem [resolvable:$true] %s664_s24 }
 0x1fd   :  { %s906_s0 = scalar_lea.vmem %s665_s24, 16  ;;  %s910_s7 = scalar_lea.vmem %s665_s24, 32 }
 0x1fe   :  { %p907_p2 = scmp.ne.s32.totalorder %s665_s24, %s906_s0  ;;  %p911_p3 = scmp.lt.s32.totalorder %s665_s24, %s665_s24 }
 0x1ff   :  { %p912_p4 = scmp.lt.s32.totalorder %s910_s7, %s906_s0 }
 0x201   :  { %p913_p5 = por %p912_p4, %p911_p3 }
 0x203   :  { %p914_p6 = pnand %p913_p5, %p907_p2 }
 0x26d   :  { %v583_v35 = vpop.xlane.xlu1 %582 }
 0x26e   :  { %v584_v23 = vrot.slane %v583_v35, 4 }
 0x270   :  { %v585_v39 = vadd.f32 %v584_v23, %v583_v35 }
 0x272   :  { %v586_v41 = vrot.slane %v585_v39, 2 }
 0x274   :  { %v587_v42 = vadd.f32 %v586_v41, %v585_v39 }
 0x276   :  { %v588_v43 = vrot.slane %v587_v42, 1 }
 0x278   :  { %v589_v44 = vadd.f32 %v588_v43, %v587_v42 }
 0x27a   :  { %819 = vpush %v589_v44 }
 0x2ab   :  { %s820_s25 = spop %819 }
 0x2ac   :  { %v591_v22 = vstv %s820_s25 }
 0x2ad   :  { %v592_v48 = vadd.f32 %v591_v22, %v565_v46 }
 0x2af   :  { %594 = vst.msk [vmem:[#allocation5] sm:$0x1] %vm131_vm7, %v592_v48 }
 0x2b0   :  { %917 = shalt.err (!%p914_p6)
}
 0x2b1   :  { %s918_s28 = scalar_lea.hbm %s1298_s5, 16 }
 0x2b2   :  { %p919_p7 = scmp.ne.s32.totalorder %s1298_s5, %s918_s28  ;;  %p922_p8 = scmp.lt.u32.totalorder %s918_s28, %s1298_s5 }
 0x2b4   :  { %p924_p9 = pnand %p922_p8, %p919_p7 }
 0x2b6   :  { %927 = shalt.err (!%p924_p9)
}
 0x2b7   :  { %667 = dma.vmem_to_hbm [thread:$0]  %s665_s24, 16, %s1298_s5, [#allocation6]  }
 0x2b8   :  { %930 = dma.done.wait [#allocation6], 16  }
 0x2b9   :  { %931 = vsyncadd [#allocation6], 4294967280 }
 0x2ba   :  { %932 = dma.done.wait [#allocation8], 32  }
 0x2bb   :  { %933 = vsyncadd [#allocation8], 4294967264 }
 0x2bc   :  { %697 = vsyncpa [#allocation6], 1 }
 0x2bd   :  { %698 = vsyncpa [#allocation8], 1 }
 0x2be   :  { %699 = vsyncmov [#allocation3] }
 0x2c1   :  { %s700_s12 = vpop.sfrf %699 }
 0x2c2   :  { %p742_p10 = scmp.ne.s32.totalorder %s700_s12, 0 }
 0x2c4   :  { %704 = shalt.err (%p742_p10)  }

</bundles_post_ra>
